<compile_context>
chip_gen: v7x
topology: tpu7x:2x2x1
jax: 0.10.0
libtpu: 0.0.40
codegen_flags: <defaults>
</compile_context>

<pallas_src>
import functools
import math

import numpy as np
import jax
import jax.numpy as jnp
from jax.scipy import linalg as jsp_linalg
from jax.experimental import pallas as pl
from jax.experimental.pallas import tpu as pltpu

# torch: EPS = torch.finfo(torch.float32).tiny ; neg_inf = log(EPS)
NEG_INF = float(np.log(np.finfo(np.float32).tiny))


# --------------------------------------------------------------------------------------
# Kernel 1: per (batch-block, row-tile) build of dep_score = logsumexp_h(masked scores)
# and the (masked, root-column-replaced) Kirchhoff matrix L.  Row-local math only.
# --------------------------------------------------------------------------------------
def _build_kernel(hds_ref, mrow_ref, mcol_ref, dep_ref, l_ref,
                  *, row_tile, h_root, smoothing_eps):
    s = hds_ref[...].astype(jnp.float32)       # (BB, TI, N, H)
    mi = mrow_ref[...]                         # (BB, TI, 1)  1.0 = valid row
    mj = mcol_ref[...]                         # (BB, 1, N)   1.0 = valid col

    _, ti, n, h = s.shape
    row_off = pl.program_id(1) * row_tile
    row_i = jax.lax.broadcasted_iota(jnp.int32, (ti, n), 0) + row_off   # global row idx
    col_j = jax.lax.broadcasted_iota(jnp.int32, (ti, n), 1)
    eye = row_i == col_j                                                # (TI, N)
    pair_valid = (mi * mj) > 0.5                                        # ~length_mask
    dep_valid = jnp.logical_and(pair_valid, jnp.logical_not(eye))       # ~dep_mask

    # logsumexp over the label dim; masked (i,j) match torch's
    # logsumexp(neg_inf * ones(H)) = neg_inf + log(H) (a 2-D select, not a 3-D one).
    mx = jnp.max(s, axis=-1)
    lse = mx + jnp.log(jnp.sum(jnp.exp(s - mx[..., None]), axis=-1))
    dep_score = jnp.where(dep_valid, lse, jnp.float32(NEG_INF + math.log(h)))
    dep_ref[...] = dep_score

    # A = exp(dep_score) + eps, zeroed on dep_mask; L = diag(rowsum(A)) - A
    a = (jnp.exp(dep_score) + smoothing_eps) * dep_valid.astype(jnp.float32)
    d = jnp.sum(a, axis=-1, keepdims=True)                  # (BB, TI, 1)
    lap = jnp.where(eye, d, 0.0) - a
    # no_root_score=True  =>  root_score = logsumexp_h(0) = log(Hr),  rho = Hr * mask
    rho = jnp.float32(h_root) * mi
    lap = jnp.where(col_j == 0, rho, lap)                   # L[:, :, 0] = rho
    lap = jnp.where(pair_valid, lap, 0.0)                   # masked_fill(length_mask, 0)
    lap = jnp.where(jnp.logical_and(eye, mj < 0.5), 1.0, lap)   # diag of pad tokens = 1
    l_ref[...] = lap


# --------------------------------------------------------------------------------------
# Kernel 2: closed-form gradient of sum(logdet(L)) w.r.t. the masked head_dep_score
# (head_parents) and the zeroed head_root_score (head_root), plus the per-row partial
# sum_j parents_[i,j] * dep_score[i,j] for the (folded) entropy reduction.
# --------------------------------------------------------------------------------------
def _grad_kernel(hds_ref, mrow_ref, mcol_ref, dep_ref, ginv_ref,
                 hp_ref, hr_ref, ent_ref, *, row_tile):
    s = hds_ref[...].astype(jnp.float32)       # (BB, TI, N, H)
    mi = mrow_ref[...]                         # (BB, TI, 1)
    mj = mcol_ref[...]                         # (BB, 1, N)
    ds = dep_ref[...]                          # (BB, TI, N)  dep_score
    g3 = ginv_ref[...]                         # (BB, TI, N)  rows of inv(L)^T

    _, ti, n, _ = s.shape
    row_off = pl.program_id(1) * row_tile
    row_i = jax.lax.broadcasted_iota(jnp.int32, (ti, n), 0) + row_off
    col_j = jax.lax.broadcasted_iota(jnp.int32, (ti, n), 1)
    eye = row_i == col_j
    pair_valid_f = mi * mj                                              # (BB, TI, N)
    dep_valid_f = pair_valid_f * (1.0 - eye.astype(jnp.float32))

    # back-prop through the masked_fills on L: overwritten positions get no gradient
    g2 = g3 * pair_valid_f
    # back-prop through the column-0 (root) overwrite
    grad_rho = jnp.sum(jnp.where(col_j == 0, g2, 0.0), axis=-1, keepdims=True)   # (BB,TI,1)
    grad_l1 = g2 * (col_j != 0).astype(jnp.float32)
    # back-prop through diag_embed(rowsum(A)) - A
    grad_d = jnp.sum(jnp.where(eye, grad_l1, 0.0), axis=-1, keepdims=True)       # (BB,TI,1)
    # back-prop through masked_fill(dep_mask, 0) and A = exp(dep_score) + eps
    grad_dep = (grad_d - grad_l1) * dep_valid_f * jnp.exp(ds)                    # (BB,TI,N)

    # back-prop through the logsumexp over the label dim.  min(., 0) keeps exp finite at
    # masked positions (where grad_dep is already exactly 0), so no extra (N,N,H) select
    # is needed to reproduce masked_fill(dep_mask, 0) on head_parents.
    p = jnp.exp(jnp.minimum(s - ds[..., None], 0.0))                             # (BB,TI,N,H)
    hp_ref[...] = grad_dep[..., None] * p

    parents_row = grad_dep * jnp.sum(p, axis=-1)                                 # (BB,TI,N)
    ent_ref[...] = jnp.sum(parents_row * ds, axis=-1, keepdims=True)             # (BB,TI,1)

    # head_root: chain exp(logsumexp(zeros)) * softmax(zeros) == 1  =>  grad_rho * mask
    hr_ref[...] = jnp.broadcast_to(grad_rho * mi, hr_ref.shape)


# --------------------------------------------------------------------------------------
# Tiling heuristic: keep the double-buffered (TI, N, H) in/out pair of kernel 2 under a
# conservative VMEM budget (fits the 32 MiB scoped default, also on the 64 MiB v7x part);
# when a full-N row tile is small, pack several batches per grid step instead.
# --------------------------------------------------------------------------------------
def _pick_tiles(b, n, h):
    budget = 8 * 1024 * 1024
    per_row = 4 * n * h * 4            # hds-in + hp-out, 2x double-buffered, f32
    ti = int(min(n, max(1, budget // max(per_row, 1))))
    if ti < n:
        ti = max(8, (ti // 8) * 8) if n >= 8 else n
        ti = min(ti, n)
    bb = 1
    if ti == n:
        per_batch = per_row * n
        bb = int(min(b, max(1, budget // max(per_batch, 1))))
    return bb, ti


def _logdet_and_invT(laplacian):
    """One batched LU gives both logdet (torch.logdet semantics) and inv(L)^T."""
    n = laplacian.shape[-1]
    idx = jnp.arange(n, dtype=jnp.int32)
    eye = jnp.eye(n, dtype=laplacian.dtype)

    def one(lb):
        lu, piv = jsp_linalg.lu_factor(lb)
        diag = jnp.diagonal(lu)
        nswaps = jnp.sum((piv.astype(jnp.int32) != idx).astype(jnp.int32))
        perm_sign = jnp.where(nswaps % 2 == 0, jnp.float32(1.0), jnp.float32(-1.0))
        sign = perm_sign * jnp.prod(jnp.sign(diag))
        logabs = jnp.sum(jnp.log(jnp.abs(diag)))
        logdet = jnp.where(sign < 0, jnp.float32(jnp.nan), logabs)  # det<0 -> nan, det=0 -> -inf
        inv = jsp_linalg.lu_solve((lu, piv), eye)
        return logdet, inv.T

    return jax.vmap(one)(laplacian)


# --------------------------------------------------------------------------------------
# Wrapper.
# --------------------------------------------------------------------------------------
def kirchhoff_normalisation(head_dep_score, head_root_score, mask,
                            *, smoothing_eps=0.0005, entropy=True):
    B, N, _, H = head_dep_score.shape
    Hr = head_root_score.shape[-1]
    BB, TI = _pick_tiles(B, N, H)
    grid = (pl.cdiv(B, BB), pl.cdiv(N, TI))

    mask_f = mask.astype(jnp.float32)
    mask_rows = mask_f.reshape(B, N, 1)
    mask_cols = mask_f.reshape(B, 1, N)

    cparams = pltpu.CompilerParams(dimension_semantics=("parallel", "parallel"))

    build = pl.pallas_call(
        functools.partial(_build_kernel, row_tile=TI, h_root=Hr,
                          smoothing_eps=smoothing_eps),
        grid=grid,
        in_specs=[
            pl.BlockSpec((BB, TI, N, H), lambda b, t: (b, t, 0, 0)),
            pl.BlockSpec((BB, TI, 1), lambda b, t: (b, t, 0)),
            pl.BlockSpec((BB, 1, N), lambda b, t: (b, 0, 0)),
        ],
        out_specs=[
            pl.BlockSpec((BB, TI, N), lambda b, t: (b, t, 0)),
            pl.BlockSpec((BB, TI, N), lambda b, t: (b, t, 0)),
        ],
        out_shape=[
            jax.ShapeDtypeStruct((B, N, N), jnp.float32),
            jax.ShapeDtypeStruct((B, N, N), jnp.float32),
        ],
        compiler_params=cparams,
    )
    dep_score, laplacian = build(head_dep_score, mask_rows, mask_cols)

    # TODO(synk): torch.logdet / the autograd matrix inverse (batched LU with pivoting)
    # has no clean Pallas equivalent; a single LU factorisation in plain JAX supplies
    # both logdet(L) and inv(L)^T for the tiny (B, N, N) matrices.
    logdet_L, inv_L_T = _logdet_and_invT(laplacian)

    grad = pl.pallas_call(
        functools.partial(_grad_kernel, row_tile=TI),
        grid=grid,
        in_specs=[
            pl.BlockSpec((BB, TI, N, H), lambda b, t: (b, t, 0, 0)),
            pl.BlockSpec((BB, TI, 1), lambda b, t: (b, t, 0)),
            pl.BlockSpec((BB, 1, N), lambda b, t: (b, 0, 0)),
            pl.BlockSpec((BB, TI, N), lambda b, t: (b, t, 0)),
            pl.BlockSpec((BB, TI, N), lambda b, t: (b, t, 0)),
        ],
        out_specs=[
            pl.BlockSpec((BB, TI, N, H), lambda b, t: (b, t, 0, 0)),
            pl.BlockSpec((BB, TI, Hr), lambda b, t: (b, t, 0)),
            pl.BlockSpec((BB, TI, 1), lambda b, t: (b, t, 0)),
        ],
        out_shape=[
            jax.ShapeDtypeStruct((B, N, N, H), jnp.float32),
            jax.ShapeDtypeStruct((B, N, Hr), jnp.float32),
            jax.ShapeDtypeStruct((B, N, 1), jnp.float32),
        ],
        compiler_params=cparams,
    )
    head_parents, head_root, ent_rows = grad(
        head_dep_score, mask_rows, mask_cols, dep_score, inv_L_T)

    if entropy:
        ent = logdet_L - jnp.sum(ent_rows[:, :, 0], axis=-1)
        return head_parents, head_root, ent
    return head_parents, head_root


if __name__ == "__main__":
    B, N, H = 2, 8, 128    # batch, sequence length, label/head dim (lane-aligned)
    key = jax.random.PRNGKey(0)
    k1, k2 = jax.random.split(key)
    head_dep_score = jax.random.normal(k1, (B, N, N, H), dtype=jnp.float32)
    head_root_score = jax.random.normal(k2, (B, N, H), dtype=jnp.float32)
    lengths = jnp.array([8, 6], dtype=jnp.int32)
    mask = jnp.arange(N, dtype=jnp.int32)[None, :] < lengths[:, None]   # (B, N) bool

    head_parents, head_root, ent = kirchhoff_normalisation(
        head_dep_score, head_root_score, mask, entropy=True)
    jax.block_until_ready((head_parents, head_root, ent))

    assert head_parents.shape == (B, N, N, H)
    assert head_root.shape == (B, N, H)
    assert ent.shape == (B,)
    print("KERNEL_OK")
</pallas_src>

<mosaic_0001>
module attributes {stable_mosaic.version = 11 : i64} {
  func.func @_build_kernel(%arg0: i32, %arg1: i32, %arg2: memref<2x8x8x128xf32, #tpu.memory_space<vmem>>, %arg3: memref<2x8x1xf32, #tpu.memory_space<vmem>>, %arg4: memref<2x1x8xf32, #tpu.memory_space<vmem>>, %arg5: memref<2x8x8xf32, #tpu.memory_space<vmem>>, %arg6: memref<2x8x8xf32, #tpu.memory_space<vmem>>) attributes {dimension_semantics = [#tpu.dimension_semantics<parallel>, #tpu.dimension_semantics<parallel>], iteration_bounds = array<i64: 1, 1>, scalar_prefetch = 0 : i64, scratch_operands = 0 : i64, tpu.core_type = #tpu.core_type<tc>, window_params = [{transform_indices = @transform_0, window_bounds = array<i64: 2, 8, 8, 128>}, {transform_indices = @transform_1, window_bounds = array<i64: 2, 8, 1>}, {transform_indices = @transform_2, window_bounds = array<i64: 2, 1, 8>}, {transform_indices = @transform_3, window_bounds = array<i64: 2, 8, 8>}, {transform_indices = @transform_4, window_bounds = array<i64: 2, 8, 8>}]} {
    %c0 = arith.constant 0 : index
    %c0_0 = arith.constant 0 : index
    %c0_1 = arith.constant 0 : index
    %c0_2 = arith.constant 0 : index
    %0 = vector.load %arg2[%c0, %c0_0, %c0_1, %c0_2] : memref<2x8x8x128xf32, #tpu.memory_space<vmem>>, vector<2x8x8x128xf32>
    %c0_3 = arith.constant 0 : index
    %c0_4 = arith.constant 0 : index
    %c0_5 = arith.constant 0 : index
    %1 = vector.load %arg3[%c0_3, %c0_4, %c0_5] : memref<2x8x1xf32, #tpu.memory_space<vmem>>, vector<2x8x1xf32>
    %c0_6 = arith.constant 0 : index
    %c0_7 = arith.constant 0 : index
    %c0_8 = arith.constant 0 : index
    %2 = vector.load %arg4[%c0_6, %c0_7, %c0_8] : memref<2x1x8xf32, #tpu.memory_space<vmem>>, vector<2x1x8xf32>
    %c8_i32 = arith.constant 8 : i32
    %3 = arith.muli %arg1, %c8_i32 : i32
    %4 = tpu.iota {dimensions = array<i32: 0>} : vector<8x8xi32>
    %5 = vector.broadcast %3 : i32 to vector<8x8xi32>
    %6 = arith.addi %4, %5 : vector<8x8xi32>
    %7 = tpu.iota {dimensions = array<i32: 1>} : vector<8x8xi32>
    %8 = arith.cmpi eq, %6, %7 : vector<8x8xi32>
    %9 = vector.broadcast %1 : vector<2x8x1xf32> to vector<2x8x8xf32>
    %10 = vector.broadcast %2 : vector<2x1x8xf32> to vector<2x8x8xf32>
    %11 = arith.mulf %9, %10 : vector<2x8x8xf32>
    %cst = arith.constant 5.000000e-01 : f32
    %12 = vector.broadcast %cst : f32 to vector<2x8x8xf32>
    %13 = arith.cmpf ogt, %11, %12 : vector<2x8x8xf32>
    %cst_9 = arith.constant dense<true> : vector<8x8xi1>
    %14 = arith.xori %8, %cst_9 : vector<8x8xi1>
    %15 = vector.shape_cast %14 : vector<8x8xi1> to vector<1x8x8xi1>
    %16 = vector.broadcast %15 : vector<1x8x8xi1> to vector<2x8x8xi1>
    %17 = arith.andi %13, %16 : vector<2x8x8xi1>
    %cst_10 = arith.constant dense<0xFF800000> : vector<2x8x8xf32>
    %18 = vector.multi_reduction <maximumf>, %0, %cst_10 [3] : vector<2x8x8x128xf32> to vector<2x8x8xf32>
    %19 = vector.shape_cast %18 : vector<2x8x8xf32> to vector<2x8x8x1xf32>
    %20 = vector.broadcast %19 : vector<2x8x8x1xf32> to vector<2x8x8x128xf32>
    %21 = arith.subf %0, %20 : vector<2x8x8x128xf32>
    %22 = math.exp %21 : vector<2x8x8x128xf32>
    %cst_11 = arith.constant dense<0.000000e+00> : vector<2x8x8xf32>
    %23 = vector.multi_reduction <add>, %22, %cst_11 [3] : vector<2x8x8x128xf32> to vector<2x8x8xf32>
    %24 = math.log %23 : vector<2x8x8xf32>
    %25 = arith.addf %18, %24 : vector<2x8x8xf32>
    %cst_12 = arith.constant -82.48452 : f32
    %26 = vector.broadcast %cst_12 : f32 to vector<2x8x8xf32>
    %27 = arith.select %17, %25, %26 : vector<2x8x8xi1>, vector<2x8x8xf32>
    %c0_13 = arith.constant 0 : index
    %c0_14 = arith.constant 0 : index
    %c0_15 = arith.constant 0 : index
    %28 = vector.load %arg5[%c0_13, %c0_14, %c0_15] : memref<2x8x8xf32, #tpu.memory_space<vmem>>, vector<2x8x8xf32>
    tpu.vector_store %arg5[%c0_13, %c0_14, %c0_15], %27 {strides = array<i32>} : memref<2x8x8xf32, #tpu.memory_space<vmem>>, vector<2x8x8xf32>,
    %29 = math.exp %27 : vector<2x8x8xf32>
    %cst_16 = arith.constant 5.000000e-04 : f32
    %30 = vector.broadcast %cst_16 : f32 to vector<2x8x8xf32>
    %31 = arith.addf %29, %30 : vector<2x8x8xf32>
    %32 = arith.extui %17 : vector<2x8x8xi1> to vector<2x8x8xi32>
    %33 = arith.sitofp %32 : vector<2x8x8xi32> to vector<2x8x8xf32>
    %34 = arith.mulf %31, %33 : vector<2x8x8xf32>
    %cst_17 = arith.constant dense<0.000000e+00> : vector<2x8xf32>
    %35 = vector.multi_reduction <add>, %34, %cst_17 [2] : vector<2x8x8xf32> to vector<2x8xf32>
    %36 = vector.shape_cast %35 : vector<2x8xf32> to vector<2x8x1xf32>
    %cst_18 = arith.constant 0.000000e+00 : f32
    %37 = vector.shape_cast %8 : vector<8x8xi1> to vector<1x8x8xi1>
    %38 = vector.broadcast %37 : vector<1x8x8xi1> to vector<2x8x8xi1>
    %39 = vector.shape_cast %36 : vector<2x8x1xf32> to vector<2x8x1xf32>
    %40 = vector.broadcast %39 : vector<2x8x1xf32> to vector<2x8x8xf32>
    %41 = vector.broadcast %cst_18 : f32 to vector<2x8x8xf32>
    %42 = arith.select %38, %40, %41 : vector<2x8x8xi1>, vector<2x8x8xf32>
    %43 = arith.subf %42, %34 : vector<2x8x8xf32>
    %cst_19 = arith.constant 1.280000e+02 : f32
    %44 = vector.broadcast %cst_19 : f32 to vector<2x8x1xf32>
    %45 = arith.mulf %44, %1 : vector<2x8x1xf32>
    %c0_i32 = arith.constant 0 : i32
    %46 = vector.broadcast %c0_i32 : i32 to vector<8x8xi32>
    %47 = arith.cmpi eq, %7, %46 : vector<8x8xi32>
    %48 = vector.shape_cast %47 : vector<8x8xi1> to vector<1x8x8xi1>
    %49 = vector.broadcast %48 : vector<1x8x8xi1> to vector<2x8x8xi1>
    %50 = vector.shape_cast %45 : vector<2x8x1xf32> to vector<2x8x1xf32>
    %51 = vector.broadcast %50 : vector<2x8x1xf32> to vector<2x8x8xf32>
    %52 = arith.select %49, %51, %43 : vector<2x8x8xi1>, vector<2x8x8xf32>
    %cst_20 = arith.constant 0.000000e+00 : f32
    %53 = vector.broadcast %cst_20 : f32 to vector<2x8x8xf32>
    %54 = arith.select %13, %52, %53 : vector<2x8x8xi1>, vector<2x8x8xf32>
    %cst_21 = arith.constant 5.000000e-01 : f32
    %55 = vector.broadcast %cst_21 : f32 to vector<2x1x8xf32>
    %56 = arith.cmpf olt, %2, %55 : vector<2x1x8xf32>
    %57 = vector.shape_cast %8 : vector<8x8xi1> to vector<1x8x8xi1>
    %58 = vector.broadcast %57 : vector<1x8x8xi1> to vector<2x8x8xi1>
    %59 = vector.broadcast %56 : vector<2x1x8xi1> to vector<2x8x8xi1>
    %60 = arith.andi %58, %59 : vector<2x8x8xi1>
    %cst_22 = arith.constant 1.000000e+00 : f32
    %61 = vector.broadcast %cst_22 : f32 to vector<2x8x8xf32>
    %62 = arith.select %60, %61, %54 : vector<2x8x8xi1>, vector<2x8x8xf32>
    %c0_23 = arith.constant 0 : index
    %c0_24 = arith.constant 0 : index
    %c0_25 = arith.constant 0 : index
    %63 = vector.load %arg6[%c0_23, %c0_24, %c0_25] : memref<2x8x8xf32, #tpu.memory_space<vmem>>, vector<2x8x8xf32>
    tpu.vector_store %arg6[%c0_23, %c0_24, %c0_25], %62 {strides = array<i32>} : memref<2x8x8xf32, #tpu.memory_space<vmem>>, vector<2x8x8xf32>,
    return
  }
  func.func @transform_0(%arg0: i32, %arg1: i32) -> (i32, i32, i32, i32) {
    %c0_i32 = arith.constant 0 : i32
    %c0_i32_0 = arith.constant 0 : i32
    %c0_i32_1 = arith.constant 0 : i32
    return %arg0, %arg1, %c0_i32, %c0_i32_0 : i32, i32, i32, i32
  }
  func.func @transform_1(%arg0: i32, %arg1: i32) -> (i32, i32, i32) {
    %c0_i32 = arith.constant 0 : i32
    %c0_i32_0 = arith.constant 0 : i32
    return %arg0, %arg1, %c0_i32 : i32, i32, i32
  }
  func.func @transform_2(%arg0: i32, %arg1: i32) -> (i32, i32, i32) {
    %c0_i32 = arith.constant 0 : i32
    %c0_i32_0 = arith.constant 0 : i32
    %c0_i32_1 = arith.constant 0 : i32
    return %arg0, %c0_i32, %c0_i32_0 : i32, i32, i32
  }
  func.func @transform_3(%arg0: i32, %arg1: i32) -> (i32, i32, i32) {
    %c0_i32 = arith.constant 0 : i32
    %c0_i32_0 = arith.constant 0 : i32
    return %arg0, %arg1, %c0_i32 : i32, i32, i32
  }
  func.func @transform_4(%arg0: i32, %arg1: i32) -> (i32, i32, i32) {
    %c0_i32 = arith.constant 0 : i32
    %c0_i32_0 = arith.constant 0 : i32
    return %arg0, %arg1, %c0_i32 : i32, i32, i32
  }
}

</mosaic_0001>

<bundles_post_ra>
// kernel: tpu_custom_call.1
= control target key start
LH: loop header
LB: loop body
LE: loop exit
PB: predicated region body
PF: predicated region fallthrough
CT: control target
= control target key end

     0   :  { %10 = vsyncpa [#allocation3], 0  ;;  %s906_s0 = inlined_call_operand.hbm [shape: f32[2,8,8,128], index: 0, kind: input, shape index: {}]   ;;  %s907_s1 = inlined_call_operand.vmem [shape: f32[2,8,1], index: 1, kind: input, shape index: {}]   ;;  %s908_s2 = inlined_call_operand.vmem [shape: f32[2,1,8], index: 2, kind: input, shape index: {}]   ;;  %s909_s3 = inlined_call_operand.hbm [shape: f32[2,8,8], index: 3, kind: output, shape index: {0}]   ;;  %s910_s4 = inlined_call_operand.hbm [shape: f32[2,8,8], index: 4, kind: output, shape index: {1}]  }
   0x1   :  { %11 = vsyncpa [#allocation4], 0 }
   0x2   :  { %12 = vsyncpa [#allocation7], 0  ;;  %s607_s15 = smov [#allocation2]   ;;  %s535_s19 = scalar_lea.hbm %s906_s0, 2048 }
   0x3   :  { %s18_s16 = sshll.u32 %s607_s15, 4  ;;  %p536_p0 = scmp.ne.s32.totalorder %s906_s0, %s535_s19  ;;  %s19_s16 = int_to_ptr.vmem [resolvable:$true] %s18_s16 }
   0x4   :  { %p539_p1 = scmp.lt.u32.totalorder %s535_s19, %s906_s0 }
   0x6   :  { %p541_p2 = pnand %p539_p1, %p536_p0 }
   0x8   :  { %544 = shalt.err (!%p541_p2)
}
   0x9   :  { %s545_s24 = scalar_lea.vmem %s19_s16, 2048  ;;  %p550_p4 = scmp.lt.s32.totalorder %s19_s16, %s19_s16 }
   0xa   :  { %p546_p3 = scmp.ne.s32.totalorder %s19_s16, %s545_s24  ;;  %p551_p5 = scmp.lt.s32.totalorder %s545_s24, %s545_s24 }
   0xc   :  { %p552_p6 = por %p551_p5, %p550_p4 }
   0xe   :  { %p553_p7 = pnand %p552_p6, %p546_p3 }
  0x10   :  { %556 = shalt.err (!%p553_p7)
}
  0x11   :  { %s608_s25 = smov 128   ;;  %s609_s26 = smov 8  }
  0x12   :  { %24 = dma.hbm_to_vmem [thread:$0]  %s906_s0, 2048, %s19_s16, [#allocation3], %s608_s25, %s608_s25, %s609_s26  }
  0x13   :  { %601 = dma.done.wait [#allocation3], 2048  }
  0x14   :  { %602 = vsyncadd [#allocation3], 4294965248  ;;  %v32_v0 = vld [vmem:[#allocation2] sm:$0xff]  ;;  %v33_v2 = vld [vmem:[#allocation2 + $0x8] sm:$0xff]  ;;  %v610_v16 = vmov 0   ;;  %vm331_vm0 = vcmask 1041409  }
  0x15   :  { %v40_v1 = vld [vmem:[#allocation2 + $0x40] sm:$0xff]  ;;  %91 = vmax.xlane.f32.xlu0 %v32_v0  ;;  %v41_v3 = vld [vmem:[#allocation2 + $0x48] sm:$0xff]  ;;  %v34_v4 = vld [vmem:[#allocation2 + $0x10] sm:$0xff]  ;;  %466 = vset.pattern.permute.xlu1 %v610_v16  ;;  %vm333_vm1 = vcmask 1042434   ;;  %vm335_vm2 = vcmask 1043459   ;;  %vm337_vm3 = vcmask 1044484  }
  0x16   :  { %107 = vmax.xlane.f32.xlu1 %v40_v1  ;;  %v42_v5 = vld [vmem:[#allocation2 + $0x50] sm:$0xff]  ;;  %v35_v6 = vld [vmem:[#allocation2 + $0x18] sm:$0xff]  ;;  %v36_v8 = vld [vmem:[#allocation2 + $0x20] sm:$0xff]  ;;  %465 = vset.pattern.permute.xlu0 %v610_v16  ;;  %vm339_vm5 = vcmask 1045509   ;;  %vm341_vm6 = vcmask 1046534   ;;  %vm343_vm7 = vcmask 1047559  }
  0x17   :  { %v43_v7 = vld [vmem:[#allocation2 + $0x58] sm:$0xff]  ;;  %v44_v9 = vld [vmem:[#allocation2 + $0x60] sm:$0xff]  ;;  %v655_v10 = vld [vmem:[#allocation2 + $0x28] sm:$0xff]  ;;  %vm611_vm8 = vmmov 1   ;;  %vm356_vm13 = vcmask 64512  }
  0x18   :  { %v657_v11 = vld [vmem:[#allocation2 + $0x68] sm:$0xff]  ;;  %v661_v12 = vld [vmem:[#allocation2 + $0x30] sm:$0xff]  ;;  %v667_v14 = vld [vmem:[#allocation2 + $0x38] sm:$0xff] }
  0x19   :  { %93 = vmax.xlane.f32.xlu0 %v33_v2  ;;  %v663_v13 = vld [vmem:[#allocation2 + $0x70] sm:$0xff]  ;;  %v669_v15 = vld [vmem:[#allocation2 + $0x78] sm:$0xff] }
  0x1a   :  { %109 = vmax.xlane.f32.xlu1 %v41_v3 }
  0x1d   :  { %95 = vmax.xlane.f32.xlu0 %v34_v4 }
  0x1e   :  { %111 = vmax.xlane.f32.xlu1 %v42_v5 }
  0x21   :  { %97 = vmax.xlane.f32.xlu0 %v35_v6 }
  0x22   :  { %113 = vmax.xlane.f32.xlu1 %v43_v7 }
  0x25   :  { %99 = vmax.xlane.f32.xlu0 %v36_v8 }
  0x26   :  { %115 = vmax.xlane.f32.xlu1 %v44_v9 }
  0x29   :  { %101 = vmax.xlane.f32.xlu0 %v655_v10 }
  0x2a   :  { %117 = vmax.xlane.f32.xlu1 %v657_v11 }
  0x2d   :  { %103 = vmax.xlane.f32.xlu0 %v661_v12 }
  0x2e   :  { %119 = vmax.xlane.f32.xlu1 %v663_v13 }
  0x31   :  { %105 = vmax.xlane.f32.xlu0 %v667_v14 }
  0x32   :  { %121 = vmax.xlane.f32.xlu1 %v669_v15 }
  0xa2   :  { %v675_v17 = vpop.xlane.xlu0 %91 }
  0xa3   :  { %v677_v18 = vpop.xlane.xlu1 %107  ;;  %v123_v19 = vsub.f32 %v32_v0, %v675_v17 }
  0xa4   :  { %v131_v20 = vsub.f32 %v40_v1, %v677_v18 }
  0xa5   :  { %v139_v21 = vmul.f32 1.442695, %v123_v19 }
  0xa6   :  { %v155_v22 = vmul.f32 1.442695, %v131_v20  ;;  %v681_v23 = vpop.xlane.xlu0 %93  ;;  %v732_v20 = vld [vmem:[%s907_s1 + $0x8] sm:$0xff] }
  0xa7   :  { %v683_v24 = vpop.xlane.xlu1 %109  ;;  %467 = vpow2.f32 %v139_v21  ;;  %v124_v25 = vsub.f32 %v33_v2, %v681_v23  ;;  %v737_v21 = vld [vmem:[%s907_s1] sm:$0xff] }
  0xa8   :  { %v132_v26 = vsub.f32 %v41_v3, %v683_v24  ;;  %469 = vpow2.f32 %v155_v22 }
  0xa9   :  { %v141_v27 = vmul.f32 1.442695, %v124_v25 }
  0xaa   :  { %v157_v28 = vmul.f32 1.442695, %v132_v26  ;;  %v687_v29 = vpop.xlane.xlu0 %95 }
  0xab   :  { %v689_v30 = vpop.xlane.xlu1 %111  ;;  %471 = vpow2.f32 %v141_v27  ;;  %v125_v31 = vsub.f32 %v34_v4, %v687_v29 }
  0xac   :  { %v133_v32 = vsub.f32 %v42_v5, %v689_v30  ;;  %473 = vpow2.f32 %v157_v28 }
  0xad   :  { %v143_v33 = vmul.f32 1.442695, %v125_v31 }
  0xae   :  { %v159_v34 = vmul.f32 1.442695, %v133_v32  ;;  %v693_v35 = vpop.xlane.xlu0 %97 }
  0xaf   :  { %v695_v36 = vpop.xlane.xlu1 %113  ;;  %475 = vpow2.f32 %v143_v33  ;;  %v126_v37 = vsub.f32 %v35_v6, %v693_v35 }
  0xb0   :  { %v134_v38 = vsub.f32 %v43_v7, %v695_v36  ;;  %477 = vpow2.f32 %v159_v34 }
  0xb1   :  { %v468_v39 = vpop.eup %467  ;;  %v145_v40 = vmul.f32 1.442695, %v126_v37 }
  0xb2   :  { %v161_v41 = vmul.f32 1.442695, %v134_v38  ;;  %171 = vadd.xlane.f32.xlu0 %v468_v39  ;;  %v699_v42 = vpop.xlane.xlu0 %99  ;;  %v470_v44 = vpop.eup %469 }
  0xb3   :  { %v701_v43 = vpop.xlane.xlu1 %115  ;;  %479 = vpow2.f32 %v145_v40  ;;  %v127_v45 = vsub.f32 %v36_v8, %v699_v42  ;;  %v53_v40 = vlaneseq }
  0xb4   :  { %v135_v46 = vsub.f32 %v44_v9, %v701_v43  ;;  %481 = vpow2.f32 %v161_v41 }
  0xb5   :  { %v472_v47 = vpop.eup %471  ;;  %v147_v48 = vmul.f32 1.442695, %v127_v45 }
  0xb6   :  { %v163_v49 = vmul.f32 1.442695, %v135_v46  ;;  %187 = vadd.xlane.f32.xlu0 %v470_v44  ;;  %173 = vadd.xlane.f32.xlu1 %v472_v47  ;;  %v705_v50 = vpop.xlane.xlu0 %101  ;;  %v474_v52 = vpop.eup %473 }
  0xb7   :  { %v707_v51 = vpop.xlane.xlu1 %117  ;;  %483 = vpow2.f32 %v147_v48  ;;  %v128_v53 = vsub.f32 %v655_v10, %v705_v50 }
  0xb8   :  { %v136_v54 = vsub.f32 %v657_v11, %v707_v51  ;;  %485 = vpow2.f32 %v163_v49  ;;  %v54_v49 = vshrl.u32 %v53_v40, 7 }
  0xb9   :  { %v476_v55 = vpop.eup %475  ;;  %v149_v56 = vmul.f32 1.442695, %v128_v53 }
  0xba   :  { %v165_v57 = vmul.f32 1.442695, %v136_v54  ;;  %189 = vadd.xlane.f32.xlu1 %v474_v52  ;;  %175 = vadd.xlane.f32.xlu0 %v476_v55  ;;  %v713_v58 = vpop.xlane.xlu0 %103  ;;  %v478_v60 = vpop.eup %477  ;;  %v741_v52 = vand.u32 127, %v53_v40 }
  0xbb   :  { %v715_v59 = vpop.xlane.xlu1 %119  ;;  %487 = vpow2.f32 %v149_v56  ;;  %v129_v61 = vsub.f32 %v661_v12, %v713_v58 }
  0xbc   :  { %v137_v62 = vsub.f32 %v663_v13, %v715_v59  ;;  %489 = vpow2.f32 %v165_v57  ;;  %vm761_vm4 = vcmp.eq.s32.totalorder %v54_v49, %v741_v52 }
  0xbd   :  { %v480_v63 = vpop.eup %479  ;;  %v151_v0 = vmul.f32 1.442695, %v129_v61  ;;  %vm800_vm9 = vmxor %vm761_vm4, %vm611_vm8 }
  0xbe   :  { %v167_v1 = vmul.f32 1.442695, %v137_v62  ;;  %191 = vadd.xlane.f32.xlu1 %v478_v60  ;;  %177 = vadd.xlane.f32.xlu0 %v480_v63  ;;  %v721_v2 = vpop.xlane.xlu0 %105  ;;  %v482_v4 = vpop.eup %481  ;;  %v743_v63 = vsub.s32 0, %v54_v49 }
  0xbf   :  { %v723_v3 = vpop.xlane.xlu1 %121  ;;  %491 = vpow2.f32 %v151_v0  ;;  %v130_v5 = vsub.f32 %v667_v14, %v721_v2 }
  0xc0   :  { %v138_v6 = vsub.f32 %v669_v15, %v723_v3  ;;  %493 = vpow2.f32 %v167_v1  ;;  %v746_v1 = vsub.s32 %v741_v52, %v54_v49 }
  0xc1   :  { %v484_v7 = vpop.eup %483  ;;  %v153_v8 = vmul.f32 1.442695, %v130_v5 }
  0xc2   :  { %v169_v9 = vmul.f32 1.442695, %v138_v6  ;;  %193 = vadd.xlane.f32.xlu1 %v482_v4  ;;  %179 = vadd.xlane.f32.xlu0 %v484_v7  ;;  %v486_v10 = vpop.eup %485  ;;  %v752_v6 = vld [vmem:[%s908_s2] sm:$0x1] }
  0xc3   :  { %495 = vpow2.f32 %v153_v8 }
  0xc4   :  { %497 = vpow2.f32 %v169_v9 }
  0xc5   :  { %v488_v11 = vpop.eup %487 }
  0xc6   :  { %195 = vadd.xlane.f32.xlu1 %v486_v10  ;;  %181 = vadd.xlane.f32.xlu0 %v488_v11  ;;  %v490_v12 = vpop.eup %489 }
  0xc9   :  { %v492_v13 = vpop.eup %491 }
  0xca   :  { %197 = vadd.xlane.f32.xlu1 %v490_v12  ;;  %183 = vadd.xlane.f32.xlu0 %v492_v13  ;;  %v494_v14 = vpop.eup %493 }
  0xcd   :  { %v496_v19 = vpop.eup %495 }
  0xce   :  { %199 = vadd.xlane.f32.xlu1 %v494_v14  ;;  %185 = vadd.xlane.f32.xlu0 %v496_v19  ;;  %v498_v15 = vpop.eup %497 }
  0xd2   :  { %201 = vadd.xlane.f32.xlu1 %v498_v15  ;;  %v75_v15 = vrot.slane %v752_v6, %v743_v63 }
  0xe3   :  { %67 = vperm.xlu1 %466, %v732_v20  }
  0xe4   :  { %62 = vperm.xlu0 %465, %v737_v21  }
 0x13f   :  { %v172_v22 = vpop.xlane.xlu0 %171 }
 0x140   :  { %499 = vlog2.f32 %v172_v22 }
 0x143   :  { %v174_v25 = vpop.xlane.xlu1 %173  ;;  %v188_v26 = vpop.xlane.xlu0 %187 }
 0x144   :  { %501 = vlog2.f32 %v174_v25 }
 0x145   :  { %503 = vlog2.f32 %v188_v26 }
 0x147   :  { %v190_v27 = vpop.xlane.xlu1 %189  ;;  %v176_v28 = vpop.xlane.xlu0 %175 }
 0x148   :  { %505 = vlog2.f32 %v190_v27 }
 0x149   :  { %507 = vlog2.f32 %v176_v28 }
 0x14a   :  { %v500_v39 = vpop.eup %499 }
 0x14b   :  { %v192_v31 = vpop.xlane.xlu1 %191  ;;  %v178_v32 = vpop.xlane.xlu0 %177  ;;  %v204_v56 = vmul.f32 0.6931472, %v500_v39 }
 0x14c   :  { %509 = vlog2.f32 %v192_v31 }
 0x14d   :  { %511 = vlog2.f32 %v178_v32  ;;  %v235_v11 = vadd.f32 %v204_v56, %v675_v17 }
 0x14e   :  { %v502_v41 = vpop.eup %501 }
 0x14f   :  { %v194_v33 = vpop.xlane.xlu1 %193  ;;  %v180_v34 = vpop.xlane.xlu0 %179  ;;  %v206_v53 = vmul.f32 0.6931472, %v502_v41 }
 0x150   :  { %513 = vlog2.f32 %v180_v34  ;;  %v504_v44 = vpop.eup %503 }
 0x151   :  { %515 = vlog2.f32 %v194_v33  ;;  %v236_v4 = vadd.f32 %v206_v53, %v681_v23  ;;  %v220_v5 = vmul.f32 0.6931472, %v504_v44  ;;  %v270_v33 = vrot.slane %v235_v11, %v746_v1 }
 0x152   :  { %v506_v47 = vpop.eup %505 }
 0x153   :  { %v196_v37 = vpop.xlane.xlu1 %195  ;;  %v182_v38 = vpop.xlane.xlu0 %181  ;;  %v222_v8 = vmul.f32 0.6931472, %v506_v47  ;;  %v274_v22 = vrot.slane %v236_v4, %v746_v1  ;;  %v243_v25 = vadd.f32 %v220_v5, %v677_v18 }
 0x154   :  { %517 = vlog2.f32 %v196_v37  ;;  %v508_v48 = vpop.eup %507 }
 0x155   :  { %519 = vlog2.f32 %v182_v38  ;;  %v208_v62 = vmul.f32 0.6931472, %v508_v48  ;;  %v244_v28 = vadd.f32 %v222_v8, %v683_v24 }
 0x156   :  { %v510_v54 = vpop.eup %509 }
 0x157   :  { %v198_v45 = vpop.xlane.xlu1 %197  ;;  %v184_v46 = vpop.xlane.xlu0 %183  ;;  %v224_v12 = vmul.f32 0.6931472, %v510_v54  ;;  %v237_v23 = vadd.f32 %v208_v62, %v687_v29  ;;  %v768_v29 = vld [vmem:[%s908_s2 + $0x1] sm:$0x1]  ;;  %v306_v48 = vrot.slane %v244_v28, %v746_v1  ;;  %s613_s2 = smov [#allocation5]  }
 0x158   :  { %521 = vlog2.f32 %v198_v45  ;;  %v512_v55 = vpop.eup %511  ;;  %v79_v24 = vrot.slane %v768_v29, %v743_v63  ;;  %v302_v45 = vrot.slane %v243_v25, %v746_v1  ;;  %s427_s9 = sshll.u32 %s613_s2, 4  ;;  %s428_s9 = int_to_ptr.vmem [resolvable:$true] %s427_s9 }
 0x159   :  { %523 = vlog2.f32 %v184_v46  ;;  %v210_v9 = vmul.f32 0.6931472, %v512_v55  ;;  %v245_v34 = vadd.f32 %v224_v12, %v689_v30  ;;  %v278_v40 = vrot.slane %v237_v23, %v746_v1  ;;  %s557_s10 = scalar_lea.vmem %s428_s9, 256  ;;  %p562_p9 = scmp.lt.s32.totalorder %s428_s9, %s428_s9 }
 0x15a   :  { %v514_v61 = vpop.eup %513  ;;  %p558_p8 = scmp.ne.s32.totalorder %s428_s9, %s557_s10  ;;  %p563_p10 = scmp.lt.s32.totalorder %s557_s10, %s557_s10 }
 0x15b   :  { %v200_v57 = vpop.xlane.xlu1 %199  ;;  %v186_v60 = vpop.xlane.xlu0 %185  ;;  %v212_v13 = vmul.f32 0.6931472, %v514_v61  ;;  %v238_v31 = vadd.f32 %v210_v9, %v693_v35  ;;  %v332_v35 = vsel %vm331_vm0, %v274_v22, %v270_v33  ;;  %v310_v55 = vrot.slane %v245_v34, %v746_v1 }
 0x15c   :  { %525 = vlog2.f32 %v200_v57  ;;  %v516_v0 = vpop.eup %515  ;;  %p564_p11 = por %p563_p10, %p562_p9 }
 0x15d   :  { %527 = vlog2.f32 %v186_v60  ;;  %v226_v26 = vmul.f32 0.6931472, %v516_v0  ;;  %v239_v37 = vadd.f32 %v212_v13, %v699_v42  ;;  %v282_v49 = vrot.slane %v238_v31, %v746_v1 }
 0x15e   :  { %v518_v7 = vpop.eup %517  ;;  %v334_v60 = vsel %vm333_vm1, %v278_v40, %v332_v35  ;;  %v612_v40 = vmov 0.0   ;;  %p565_p12 = pnand %p564_p11, %p558_p8 }
 0x15f   :  { %v520_v10 = vpop.eup %519  ;;  %v202_v14 = vpop.xlane.xlu1 %201  ;;  %v228_v32 = vmul.f32 0.6931472, %v518_v7  ;;  %v246_v46 = vadd.f32 %v226_v26, %v695_v36  ;;  %v286_v56 = vrot.slane %v239_v37, %v746_v1  ;;  %v345_v7 = vsel %vm331_vm0, %v306_v48, %v302_v45 }
 0x160   :  { %v214_v19 = vmul.f32 0.6931472, %v520_v10  ;;  %529 = vlog2.f32 %v202_v14  ;;  %v336_v8 = vsel %vm335_vm2, %v282_v49, %v334_v60  ;;  %v383_v48 = vmul.f32 128.0, %v737_v21 }
 0x161   :  { %v314_v4 = vrot.slane %v246_v46, %v746_v1  ;;  %v338_v13 = vsel %vm337_vm3, %v286_v56, %v336_v8  ;;  %v384_v49 = vmul.f32 128.0, %v732_v20 }
 0x162   :  { %v522_v27 = vpop.eup %521  ;;  %v240_v41 = vadd.f32 %v214_v19, %v705_v50  ;;  %v247_v50 = vadd.f32 %v228_v32, %v701_v43 }
 0x163   :  { %v524_v18 = vpop.eup %523  ;;  %v230_v38 = vmul.f32 0.6931472, %v522_v27  ;;  %v63_v39 = vpop.permute.xlu0 %62 }
 0x164   :  { %v216_v44 = vmul.f32 0.6931472, %v524_v18  ;;  %v782_v30 = vmul.f32 %v75_v15, %v63_v39  ;;  %v68_v42 = vpop.permute.xlu1 %67  ;;  %v290_v61 = vrot.slane %v240_v41, %v746_v1  ;;  %v318_v9 = vrot.slane %v247_v50, %v746_v1 }
 0x165   :  { %v248_v57 = vadd.f32 %v230_v38, %v707_v51  ;;  %v793_v0 = vmul.f32 %v79_v24, %v68_v42 }
 0x166   :  { %v526_v47 = vpop.eup %525  ;;  %v241_v53 = vadd.f32 %v216_v44, %v713_v58  ;;  %vm84_vm10 = vcmp.gt.f32.partialorder %v782_v30, 0.5  ;;  %v340_v19 = vsel %vm339_vm5, %v290_v61, %v338_v13 }
 0x167   :  { %v528_v54 = vpop.eup %527  ;;  %v232_v36 = vmul.f32 0.6931472, %v526_v47  ;;  %v322_v11 = vrot.slane %v248_v57, %v746_v1  ;;  %vm819_vm11 = vmand %vm84_vm10, %vm800_vm9  ;;  %vm85_vm12 = vcmp.gt.f32.partialorder %v793_v0, 0.5 }
 0x168   :  { %v218_v62 = vmul.f32 0.6931472, %v528_v54  ;;  %v294_v43 = vrot.slane %v241_v53, %v746_v1  ;;  %vm836_vm14 = vmand %vm85_vm12, %vm800_vm9  ;;  %v455_v41 = vsel %vm819_vm11, 1.0, %v612_v40 }
 0x169   :  { %v249_v58 = vadd.f32 %v232_v36, %v715_v59  ;;  %v346_v59 = vsel %vm333_vm1, %v310_v55, %v345_v7  ;;  %v456_v45 = vsel %vm836_vm14, 1.0, %v612_v40 }
 0x16a   :  { %v530_v51 = vpop.eup %529  ;;  %v242_v10 = vadd.f32 %v218_v62, %v721_v2  ;;  %v347_v2 = vsel %vm335_vm2, %v314_v4, %v346_v59  ;;  %v342_v25 = vsel %vm341_vm6, %v294_v43, %v340_v19 }
 0x16b   :  { %v234_v12 = vmul.f32 0.6931472, %v530_v51  ;;  %v326_v14 = vrot.slane %v249_v58, %v746_v1  ;;  %v348_v27 = vsel %vm337_vm3, %v318_v9, %v347_v2 }
 0x16c   :  { %v298_v23 = vrot.slane %v242_v10, %v746_v1 }
 0x16d   :  { %v250_v22 = vadd.f32 %v234_v12, %v723_v3  ;;  %v349_v3 = vsel %vm339_vm5, %v322_v11, %v348_v27 }
 0x16e   :  { %v344_v26 = vsel %vm343_vm7, %v298_v23, %v342_v25  ;;  %v350_v33 = vsel %vm341_vm6, %v326_v14, %v349_v3 }
 0x16f   :  { %v330_v28 = vrot.slane %v250_v22, %v746_v1  ;;  %v354_v31 = vsel %vm819_vm11, %v344_v26, -82.48452 }
 0x170   :  { %v359_v18 = vmul.f32 1.442695, %v354_v31  ;;  %357 = vst.msk [vmem:[#allocation5] sm:$0xff] %vm356_vm13, %v354_v31 }
 0x171   :  { %v351_v1 = vsel %vm343_vm7, %v330_v28, %v350_v33 }
 0x172   :  { %531 = vpow2.f32 %v359_v18  ;;  %v355_v34 = vsel %vm836_vm14, %v351_v1, -82.48452 }
 0x173   :  { %v361_v37 = vmul.f32 1.442695, %v355_v34  ;;  %358 = vst.msk [vmem:[#allocation5 + $0x8] sm:$0xff] %vm356_vm13, %v355_v34 }
 0x175   :  { %533 = vpow2.f32 %v361_v37 }
 0x17c   :  { %v532_v38 = vpop.eup %531 }
 0x17d   :  { %v363_v39 = vadd.f32 0.0005, %v532_v38 }
 0x17f   :  { %v534_v44 = vpop.eup %533  ;;  %v369_v24 = vmul.f32 %v455_v41, %v363_v39 }
 0x180   :  { %v364_v35 = vadd.f32 0.0005, %v534_v44 }
 0x181   :  { %v371_v46 = vsel %vm356_vm13, %v369_v24, 0.0 }
 0x182   :  { %372 = vadd.xlane.f32.xlu1 %v371_v46  ;;  %v370_v42 = vmul.f32 %v456_v45, %v364_v35 }
 0x184   :  { %v374_v47 = vsel %vm356_vm13, %v370_v42, 0.0 }
 0x185   :  { %375 = vadd.xlane.f32.xlu0 %v374_v47 }
 0x193   :  { %390 = vperm.xlu1 %466, %v383_v48  }
 0x197   :  { %395 = vperm.xlu1 %466, %v384_v49  }
 0x198   :  { %568 = shalt.err (!%p565_p12)
}
 0x199   :  { %s569_s13 = scalar_lea.hbm %s909_s3, 256 }
 0x19a   :  { %p570_p13 = scmp.ne.s32.totalorder %s909_s3, %s569_s13  ;;  %p573_p0 = scmp.lt.u32.totalorder %s569_s13, %s909_s3 }
 0x19c   :  { %p575_p1 = pnand %p573_p0, %p570_p13 }
 0x19e   :  { %578 = shalt.err (!%p575_p1)
}
 0x19f   :  { %433 = dma.vmem_to_hbm [thread:$0]  %s428_s9, 256, %s909_s3, [#allocation4], %s608_s25, %s608_s25, %s609_s26   ;;  %vm402_vm15 = vcmp.lt.f32.partialorder %v752_v6, 0.5  ;;  %vm403_vm0 = vcmp.lt.f32.partialorder %v768_v29, 0.5  ;;  %vm385_vm2 = vcmp.eq.s32.totalorder %v741_v52, 0 }
 0x1a0   :  { %v404_v20 = vsel %vm402_vm15, 1, %v610_v16  ;;  %v405_v50 = vsel %vm403_vm0, 1, %v610_v16  ;;  %s614_s3 = smov [#allocation6]  }
 0x1a1   :  { %v409_v21 = vrot.slane %v404_v20, %v743_v63  ;;  %v413_v55 = vrot.slane %v405_v50, %v743_v63  ;;  %s439_s20 = sshll.u32 %s614_s3, 4  ;;  %s440_s20 = int_to_ptr.vmem [resolvable:$true] %s439_s20 }
 0x1a2   :  { %s579_s21 = scalar_lea.vmem %s440_s20, 256  ;;  %p584_p3 = scmp.lt.s32.totalorder %s440_s20, %s440_s20 }
 0x1a3   :  { %vm414_vm1 = vcmp.eq.s32.totalorder %v409_v21, 1  ;;  %vm415_vm5 = vcmp.eq.s32.totalorder %v413_v55, 1  ;;  %p580_p2 = scmp.ne.s32.totalorder %s440_s20, %s579_s21  ;;  %p585_p4 = scmp.lt.s32.totalorder %s579_s21, %s579_s21 }
 0x1a4   :  { %vm416_vm3 = vmand %vm761_vm4, %vm414_vm1 }
 0x1a5   :  { %vm417_vm6 = vmand %vm761_vm4, %vm415_vm5  ;;  %p586_p5 = por %p585_p4, %p584_p3 }
 0x1a7   :  { %p587_p6 = pnand %p586_p5, %p580_p2 }
 0x20f   :  { %v373_v53 = vpop.xlane.xlu1 %372 }
 0x210   :  { %v379_v54 = vsel %vm761_vm4, %v373_v53, 0.0 }
 0x211   :  { %v381_v56 = vsub.f32 %v379_v54, %v369_v24 }
 0x212   :  { %v376_v57 = vpop.xlane.xlu0 %375 }
 0x213   :  { %v391_v6 = vpop.permute.xlu1 %390  ;;  %v380_v29 = vsel %vm761_vm4, %v376_v57, 0.0 }
 0x214   :  { %v398_v36 = vsel %vm385_vm2, %v391_v6, %v381_v56  ;;  %v382_v16 = vsub.f32 %v380_v29, %v370_v42 }
 0x215   :  { %v400_v60 = vsel %vm84_vm10, %v398_v36, 0.0 }
 0x216   :  { %v418_v61 = vsel %vm416_vm3, 1.0, %v400_v60 }
 0x217   :  { %420 = vst.msk [vmem:[#allocation6] sm:$0xff] %vm356_vm13, %v418_v61  ;;  %v396_v52 = vpop.permute.xlu1 %395 }
 0x218   :  { %v399_v63 = vsel %vm385_vm2, %v396_v52, %v382_v16 }
 0x219   :  { %v401_v62 = vsel %vm85_vm12, %v399_v63, 0.0 }
 0x21a   :  { %v419_v4 = vsel %vm417_vm6, 1.0, %v401_v62 }
 0x21b   :  { %421 = vst.msk [vmem:[#allocation6 + $0x8] sm:$0xff] %vm356_vm13, %v419_v4 }
 0x21c   :  { %590 = shalt.err (!%p587_p6)
}
 0x21d   :  { %s591_s24 = scalar_lea.hbm %s910_s4, 256 }
 0x21e   :  { %p592_p7 = scmp.ne.s32.totalorder %s910_s4, %s591_s24  ;;  %p595_p8 = scmp.lt.u32.totalorder %s591_s24, %s910_s4 }
 0x220   :  { %p597_p9 = pnand %p595_p8, %p592_p7 }
 0x222   :  { %600 = shalt.err (!%p597_p9)
}
 0x223   :  { %445 = dma.vmem_to_hbm [thread:$0]  %s440_s20, 256, %s910_s4, [#allocation7], %s608_s25, %s608_s25, %s609_s26  }
 0x224   :  { %603 = dma.done.wait [#allocation4], 256  }
 0x225   :  { %604 = vsyncadd [#allocation4], 4294967040 }
 0x226   :  { %605 = dma.done.wait [#allocation7], 256  }
 0x227   :  { %606 = vsyncadd [#allocation7], 4294967040 }
 0x228   :  { %452 = vsyncpa [#allocation3], 1 }
 0x229   :  { %453 = vsyncpa [#allocation4], 1 }
 0x22a   :  { %454 = vsyncpa [#allocation7], 1 }

</bundles_post_ra>
